<compile_context>
chip_gen: v5e
topology: v5e:2x2
jax: 0.10.0
libtpu: 0.0.40
codegen_flags: <defaults>
</compile_context>

<pallas_src>
import jax
import jax.numpy as jnp
from jax.experimental import pallas as pl
from jax.experimental.pallas import tpu as pltpu


def gru_linear_kernel(x_ref, h0_ref, w_ih_ref, w_hh_ref, b_gi_ref, b_hn_ref,
                      w_lin_ref, b_lin_ref, out_ref, h_seq):
    """GRU recurrence + output projection, all arrays resident in VMEM.

    Refs:
      x_ref:     (S, I)   f32   input sequence
      h0_ref:    (1, H)   f32   initial hidden state
      w_ih_ref:  (I, 3H)  bf16  input->gate weights, lane order [r | z | n]
      w_hh_ref:  (H, 3H)  bf16  hidden->gate weights, lane order [r | z | n]
      b_gi_ref:  (1, 3H)  f32   b_ih with b_hh folded in for the r and z gates
      b_hn_ref:  (1, H)   f32   b_hh for the n gate (applied inside r * (.))
      w_lin_ref: (H, O)   bf16  final linear weights
      b_lin_ref: (1, O)   f32
      out_ref:   (S, O)   f32   output
      h_seq:     (S, H)   f32   VMEM scratch holding every h_t for the Linear
    """
    S = x_ref.shape[0]
    H = h0_ref.shape[1]

    # --- Hoisted, gate-fused input projection for ALL timesteps --------------
    # One (S, I) @ (I, 3H) bf16 matmul, f32 accumulate.  b_hh_r / b_hh_z are
    # already folded into b_gi, so the loop never adds them.
    gi = (jnp.dot(x_ref[...].astype(jnp.bfloat16), w_ih_ref[...],
                  preferred_element_type=jnp.float32) + b_gi_ref[...])   # (S, 3H)

    w_hh = w_hh_ref[...]            # (H, 3H) bf16, loaded once
    b_hn = b_hn_ref[...]            # (1, H)  f32

    # --- Serial recurrence, fully unrolled (S small & static), h in vregs ----
    h = h0_ref[...]                                                     # (1, H) f32
    for t in range(S):
        # Single fused recurrent matmul: (1, H) @ (H, 3H) -> (1, 3H).
        gh = jnp.dot(h.astype(jnp.bfloat16), w_hh,
                     preferred_element_type=jnp.float32)                # (1, 3H)

        # One sigmoid over the packed 2H-lane [r | z] slice (1 EUP push).
        rz = jax.nn.sigmoid(gi[t:t + 1, :2 * H] + gh[:, :2 * H])        # (1, 2H)
        r = rz[:, :H]
        z = rz[:, H:]

        # PyTorch GRU "new" gate: n = tanh(x@W_in + b_in + r*(h@W_hn + b_hn)).
        n = jnp.tanh(gi[t:t + 1, 2 * H:] + r * (gh[:, 2 * H:] + b_hn))
        h = (1.0 - z) * n + z * h

        # Off-critical-path store of h_t for the batched output projection.
        h_seq[pl.ds(t, 1), :] = h

    # --- Batched final Linear: one (S,H)@(H,O) matmul + one store ------------
    out_ref[...] = (jnp.dot(h_seq[...].astype(jnp.bfloat16), w_lin_ref[...],
                            preferred_element_type=jnp.float32) + b_lin_ref[...])


def my_gru_forward(x, h0, params):
    """Pallas wrapper: x (S, I) -> (S, O).  Weights cast to bf16 for the MXU."""
    S = x.shape[0]
    H = h0.shape[1]
    O = params["w_lin"].shape[1]

    w_ih = params["w_ih"].astype(jnp.bfloat16)      # (I, 3H)
    w_hh = params["w_hh"].astype(jnp.bfloat16)      # (H, 3H)
    w_lin = params["w_lin"].astype(jnp.bfloat16)    # (H, O)

    vmem = pl.BlockSpec(memory_space=pltpu.MemorySpace.VMEM)
    return pl.pallas_call(
        gru_linear_kernel,
        out_shape=jax.ShapeDtypeStruct((S, O), jnp.float32),
        in_specs=[vmem] * 8,
        out_specs=vmem,
        scratch_shapes=[pltpu.VMEM((S, H), jnp.float32)],
    )(x, h0, w_ih, w_hh, params["b_gi"], params["b_hn"], w_lin, params["b_lin"])


def init_params(key, input_size, hidden_size, output_size):
    """Deterministic init matching PyTorch parameter shapes (U(-k, k), k=1/sqrt(H)),
    restructured with gates concatenated along the lane axis ([r | z | n]) and
    the r/z halves of b_hh folded into the input-projection bias."""
    ks = jax.random.split(key, 6)
    k = 1.0 / jnp.sqrt(hidden_size)
    H = hidden_size

    # PyTorch native shapes, gate rows stacked as [r; z; n].
    w_ih = jax.random.uniform(ks[0], (3 * H, input_size), jnp.float32, -k, k)
    w_hh = jax.random.uniform(ks[1], (3 * H, H), jnp.float32, -k, k)
    b_ih = jax.random.uniform(ks[2], (3 * H,), jnp.float32, -k, k)
    b_hh = jax.random.uniform(ks[3], (3 * H,), jnp.float32, -k, k)
    w_lin = jax.random.uniform(ks[4], (output_size, H), jnp.float32, -k, k)
    b_lin = jax.random.uniform(ks[5], (output_size,), jnp.float32, -k, k)

    # Fold b_hh_r, b_hh_z into the hoisted bias; keep b_hh_n separate (it must
    # stay inside r * (h @ W_hn + b_hn)).
    b_gi = b_ih.at[:2 * H].add(b_hh[:2 * H]).reshape(1, 3 * H)
    b_hn = b_hh[2 * H:].reshape(1, H)

    return {
        "w_ih": w_ih.T,                   # (I, 3H), lane order [r | z | n]
        "w_hh": w_hh.T,                   # (H, 3H)
        "b_gi": b_gi,                     # (1, 3H)
        "b_hn": b_hn,                     # (1, H)
        "w_lin": w_lin.T,                 # (H, O)
        "b_lin": b_lin.reshape(1, -1),    # (1, O)
    }


def reference_forward(x, h0, params, matmul_dtype):
    """Pure-JAX reference of the same GRU + Linear math.

    matmul_dtype=jnp.bfloat16 mirrors the kernel's MXU operand cast exactly;
    matmul_dtype=jnp.float32 gives the full-precision baseline.
    """
    H = h0.shape[1]

    def mm(a, b):
        return jnp.dot(a.astype(matmul_dtype), b.astype(matmul_dtype),
                       preferred_element_type=jnp.float32)

    gi = mm(x, params["w_ih"]) + params["b_gi"]                      # (S, 3H)
    h = h0
    hs = []
    for t in range(x.shape[0]):
        gh = mm(h, params["w_hh"])                                   # (1, 3H)
        rz = jax.nn.sigmoid(gi[t:t + 1, :2 * H] + gh[:, :2 * H])
        r, z = rz[:, :H], rz[:, H:]
        n = jnp.tanh(gi[t:t + 1, 2 * H:] + r * (gh[:, 2 * H:] + params["b_hn"]))
        h = (1.0 - z) * n + z * h
        hs.append(h)
    h_seq = jnp.concatenate(hs, axis=0)
    return mm(h_seq, params["w_lin"]) + params["b_lin"]


if __name__ == "__main__":
    input_size = 16    # self.input_shape
    hidden_size = 32
    output_size = 8
    seq_len = 8

    key = jax.random.PRNGKey(0)
    k_x, k_h0, k_p = jax.random.split(key, 3)

    x = jax.random.normal(k_x, (seq_len, input_size), jnp.float32)
    # TODO(synk): original module draws h0 = torch.randn(...) fresh at every
    # forward call (non-deterministic); here it is a deterministic draw.
    h0 = jax.random.normal(k_h0, (1, hidden_size), jnp.float32)
    params = init_params(k_p, input_size, hidden_size, output_size)

    out = my_gru_forward(x, h0, params)
    out = jax.block_until_ready(out)
    assert out.shape == (seq_len, output_size)

    # Tight check against a reference that does the same bf16 MXU math.
    ref_bf16 = reference_forward(x, h0, params, matmul_dtype=jnp.bfloat16)
    assert jnp.allclose(out, ref_bf16, atol=1e-3, rtol=1e-3), (
        jnp.max(jnp.abs(out - ref_bf16)))

    # Loose check against the full-f32 baseline (bf16 operand rounding only).
    ref_f32 = reference_forward(x, h0, params, matmul_dtype=jnp.float32)
    assert jnp.allclose(out, ref_f32, atol=1e-1, rtol=1e-1), (
        jnp.max(jnp.abs(out - ref_f32)))

    print("KERNEL_OK")
</pallas_src>

<mosaic_0001>
module attributes {stable_mosaic.version = 11 : i64} {
  func.func @gru_linear_kernel(%arg0: memref<8x16xf32, #tpu.memory_space<vmem>>, %arg1: memref<1x32xf32, #tpu.memory_space<vmem>>, %arg2: memref<16x96xbf16, #tpu.memory_space<vmem>>, %arg3: memref<32x96xbf16, #tpu.memory_space<vmem>>, %arg4: memref<1x96xf32, #tpu.memory_space<vmem>>, %arg5: memref<1x32xf32, #tpu.memory_space<vmem>>, %arg6: memref<32x8xbf16, #tpu.memory_space<vmem>>, %arg7: memref<1x8xf32, #tpu.memory_space<vmem>>, %arg8: memref<8x8xf32, #tpu.memory_space<vmem>>, %arg9: memref<8x32xf32, #tpu.memory_space<vmem>>) attributes {dimension_semantics = [], scalar_prefetch = 0 : i64, scratch_operands = 1 : i64, tpu.core_type = #tpu.core_type<tc>} {
    %c0 = arith.constant 0 : index
    %c0_0 = arith.constant 0 : index
    %0 = vector.load %arg0[%c0, %c0_0] : memref<8x16xf32, #tpu.memory_space<vmem>>, vector<8x16xf32>
    %1 = arith.truncf %0 : vector<8x16xf32> to vector<8x16xbf16>
    %c0_1 = arith.constant 0 : index
    %c0_2 = arith.constant 0 : index
    %2 = vector.load %arg2[%c0_1, %c0_2] : memref<16x96xbf16, #tpu.memory_space<vmem>>, vector<16x96xbf16>
    %cst = arith.constant dense<0.000000e+00> : vector<8x96xf32>
    %3 = tpu.matmul %1, %2, %cst {dimension_numbers = #tpu.dot_dimension_numbers<[1], [0], [0], [1], [0, 0, 1, 1], [], []>} : vector<8x16xbf16>, vector<16x96xbf16>, vector<8x96xf32> -> vector<8x96xf32>
    %c0_3 = arith.constant 0 : index
    %c0_4 = arith.constant 0 : index
    %4 = vector.load %arg4[%c0_3, %c0_4] : memref<1x96xf32, #tpu.memory_space<vmem>>, vector<1x96xf32>
    %5 = vector.broadcast %4 : vector<1x96xf32> to vector<8x96xf32>
    %6 = arith.addf %3, %5 : vector<8x96xf32>
    %c0_5 = arith.constant 0 : index
    %c0_6 = arith.constant 0 : index
    %7 = vector.load %arg3[%c0_5, %c0_6] : memref<32x96xbf16, #tpu.memory_space<vmem>>, vector<32x96xbf16>
    %c0_7 = arith.constant 0 : index
    %c0_8 = arith.constant 0 : index
    %8 = vector.load %arg5[%c0_7, %c0_8] : memref<1x32xf32, #tpu.memory_space<vmem>>, vector<1x32xf32>
    %c0_9 = arith.constant 0 : index
    %c0_10 = arith.constant 0 : index
    %9 = vector.load %arg1[%c0_9, %c0_10] : memref<1x32xf32, #tpu.memory_space<vmem>>, vector<1x32xf32>
    %10 = arith.truncf %9 : vector<1x32xf32> to vector<1x32xbf16>
    %cst_11 = arith.constant dense<0.000000e+00> : vector<1x96xf32>
    %11 = tpu.matmul %10, %7, %cst_11 {dimension_numbers = #tpu.dot_dimension_numbers<[1], [0], [0], [1], [0, 0, 1, 1], [], []>} : vector<1x32xbf16>, vector<32x96xbf16>, vector<1x96xf32> -> vector<1x96xf32>
    %12 = vector.extract_strided_slice %6 {offsets = [0, 0], sizes = [1, 64], strides = [1, 1]} : vector<8x96xf32> to vector<1x64xf32>
    %13 = vector.extract_strided_slice %11 {offsets = [0, 0], sizes = [1, 64], strides = [1, 1]} : vector<1x96xf32> to vector<1x64xf32>
    %14 = arith.addf %12, %13 : vector<1x64xf32>
    %15 = arith.negf %14 : vector<1x64xf32>
    %16 = math.exp %15 : vector<1x64xf32>
    %cst_12 = arith.constant 1.000000e+00 : f32
    %17 = vector.broadcast %cst_12 : f32 to vector<1x64xf32>
    %18 = arith.addf %17, %16 : vector<1x64xf32>
    %19 = arith.divf %17, %18 : vector<1x64xf32>
    %20 = vector.extract_strided_slice %19 {offsets = [0, 0], sizes = [1, 32], strides = [1, 1]} : vector<1x64xf32> to vector<1x32xf32>
    %21 = vector.extract_strided_slice %19 {offsets = [0, 32], sizes = [1, 32], strides = [1, 1]} : vector<1x64xf32> to vector<1x32xf32>
    %22 = vector.extract_strided_slice %6 {offsets = [0, 64], sizes = [1, 32], strides = [1, 1]} : vector<8x96xf32> to vector<1x32xf32>
    %23 = vector.extract_strided_slice %11 {offsets = [0, 64], sizes = [1, 32], strides = [1, 1]} : vector<1x96xf32> to vector<1x32xf32>
    %24 = arith.addf %23, %8 : vector<1x32xf32>
    %25 = arith.mulf %20, %24 : vector<1x32xf32>
    %26 = arith.addf %22, %25 : vector<1x32xf32>
    %27 = math.tanh %26 : vector<1x32xf32>
    %cst_13 = arith.constant 1.000000e+00 : f32
    %28 = vector.broadcast %cst_13 : f32 to vector<1x32xf32>
    %29 = arith.subf %28, %21 : vector<1x32xf32>
    %30 = arith.mulf %29, %27 : vector<1x32xf32>
    %31 = arith.mulf %21, %9 : vector<1x32xf32>
    %32 = arith.addf %30, %31 : vector<1x32xf32>
    %c0_14 = arith.constant 0 : index
    %c0_15 = arith.constant 0 : index
    %33 = vector.load %arg9[%c0_14, %c0_15] : memref<8x32xf32, #tpu.memory_space<vmem>>, vector<1x32xf32>
    tpu.vector_store %arg9[%c0_14, %c0_15], %32 {strides = array<i32>} : memref<8x32xf32, #tpu.memory_space<vmem>>, vector<1x32xf32>,
    %34 = arith.truncf %32 : vector<1x32xf32> to vector<1x32xbf16>
    %cst_16 = arith.constant dense<0.000000e+00> : vector<1x96xf32>
    %35 = tpu.matmul %34, %7, %cst_16 {dimension_numbers = #tpu.dot_dimension_numbers<[1], [0], [0], [1], [0, 0, 1, 1], [], []>} : vector<1x32xbf16>, vector<32x96xbf16>, vector<1x96xf32> -> vector<1x96xf32>
    %36 = vector.extract_strided_slice %6 {offsets = [1, 0], sizes = [1, 64], strides = [1, 1]} : vector<8x96xf32> to vector<1x64xf32>
    %37 = vector.extract_strided_slice %35 {offsets = [0, 0], sizes = [1, 64], strides = [1, 1]} : vector<1x96xf32> to vector<1x64xf32>
    %38 = arith.addf %36, %37 : vector<1x64xf32>
    %39 = arith.negf %38 : vector<1x64xf32>
    %40 = math.exp %39 : vector<1x64xf32>
    %cst_17 = arith.constant 1.000000e+00 : f32
    %41 = vector.broadcast %cst_17 : f32 to vector<1x64xf32>
    %42 = arith.addf %41, %40 : vector<1x64xf32>
    %43 = arith.divf %41, %42 : vector<1x64xf32>
    %44 = vector.extract_strided_slice %43 {offsets = [0, 0], sizes = [1, 32], strides = [1, 1]} : vector<1x64xf32> to vector<1x32xf32>
    %45 = vector.extract_strided_slice %43 {offsets = [0, 32], sizes = [1, 32], strides = [1, 1]} : vector<1x64xf32> to vector<1x32xf32>
    %46 = vector.extract_strided_slice %6 {offsets = [1, 64], sizes = [1, 32], strides = [1, 1]} : vector<8x96xf32> to vector<1x32xf32>
    %47 = vector.extract_strided_slice %35 {offsets = [0, 64], sizes = [1, 32], strides = [1, 1]} : vector<1x96xf32> to vector<1x32xf32>
    %48 = arith.addf %47, %8 : vector<1x32xf32>
    %49 = arith.mulf %44, %48 : vector<1x32xf32>
    %50 = arith.addf %46, %49 : vector<1x32xf32>
    %51 = math.tanh %50 : vector<1x32xf32>
    %cst_18 = arith.constant 1.000000e+00 : f32
    %52 = vector.broadcast %cst_18 : f32 to vector<1x32xf32>
    %53 = arith.subf %52, %45 : vector<1x32xf32>
    %54 = arith.mulf %53, %51 : vector<1x32xf32>
    %55 = arith.mulf %45, %32 : vector<1x32xf32>
    %56 = arith.addf %54, %55 : vector<1x32xf32>
    %c1 = arith.constant 1 : index
    %c0_19 = arith.constant 0 : index
    %57 = vector.load %arg9[%c1, %c0_19] : memref<8x32xf32, #tpu.memory_space<vmem>>, vector<1x32xf32>
    tpu.vector_store %arg9[%c1, %c0_19], %56 {strides = array<i32>} : memref<8x32xf32, #tpu.memory_space<vmem>>, vector<1x32xf32>,
    %58 = arith.truncf %56 : vector<1x32xf32> to vector<1x32xbf16>
    %cst_20 = arith.constant dense<0.000000e+00> : vector<1x96xf32>
    %59 = tpu.matmul %58, %7, %cst_20 {dimension_numbers = #tpu.dot_dimension_numbers<[1], [0], [0], [1], [0, 0, 1, 1], [], []>} : vector<1x32xbf16>, vector<32x96xbf16>, vector<1x96xf32> -> vector<1x96xf32>
    %60 = vector.extract_strided_slice %6 {offsets = [2, 0], sizes = [1, 64], strides = [1, 1]} : vector<8x96xf32> to vector<1x64xf32>
    %61 = vector.extract_strided_slice %59 {offsets = [0, 0], sizes = [1, 64], strides = [1, 1]} : vector<1x96xf32> to vector<1x64xf32>
    %62 = arith.addf %60, %61 : vector<1x64xf32>
    %63 = arith.negf %62 : vector<1x64xf32>
    %64 = math.exp %63 : vector<1x64xf32>
    %cst_21 = arith.constant 1.000000e+00 : f32
    %65 = vector.broadcast %cst_21 : f32 to vector<1x64xf32>
    %66 = arith.addf %65, %64 : vector<1x64xf32>
    %67 = arith.divf %65, %66 : vector<1x64xf32>
    %68 = vector.extract_strided_slice %67 {offsets = [0, 0], sizes = [1, 32], strides = [1, 1]} : vector<1x64xf32> to vector<1x32xf32>
    %69 = vector.extract_strided_slice %67 {offsets = [0, 32], sizes = [1, 32], strides = [1, 1]} : vector<1x64xf32> to vector<1x32xf32>
    %70 = vector.extract_strided_slice %6 {offsets = [2, 64], sizes = [1, 32], strides = [1, 1]} : vector<8x96xf32> to vector<1x32xf32>
    %71 = vector.extract_strided_slice %59 {offsets = [0, 64], sizes = [1, 32], strides = [1, 1]} : vector<1x96xf32> to vector<1x32xf32>
    %72 = arith.addf %71, %8 : vector<1x32xf32>
    %73 = arith.mulf %68, %72 : vector<1x32xf32>
    %74 = arith.addf %70, %73 : vector<1x32xf32>
    %75 = math.tanh %74 : vector<1x32xf32>
    %cst_22 = arith.constant 1.000000e+00 : f32
    %76 = vector.broadcast %cst_22 : f32 to vector<1x32xf32>
    %77 = arith.subf %76, %69 : vector<1x32xf32>
    %78 = arith.mulf %77, %75 : vector<1x32xf32>
    %79 = arith.mulf %69, %56 : vector<1x32xf32>
    %80 = arith.addf %78, %79 : vector<1x32xf32>
    %c2 = arith.constant 2 : index
    %c0_23 = arith.constant 0 : index
    %81 = vector.load %arg9[%c2, %c0_23] : memref<8x32xf32, #tpu.memory_space<vmem>>, vector<1x32xf32>
    tpu.vector_store %arg9[%c2, %c0_23], %80 {strides = array<i32>} : memref<8x32xf32, #tpu.memory_space<vmem>>, vector<1x32xf32>,
    %82 = arith.truncf %80 : vector<1x32xf32> to vector<1x32xbf16>
    %cst_24 = arith.constant dense<0.000000e+00> : vector<1x96xf32>
    %83 = tpu.matmul %82, %7, %cst_24 {dimension_numbers = #tpu.dot_dimension_numbers<[1], [0], [0], [1], [0, 0, 1, 1], [], []>} : vector<1x32xbf16>, vector<32x96xbf16>, vector<1x96xf32> -> vector<1x96xf32>
    %84 = vector.extract_strided_slice %6 {offsets = [3, 0], sizes = [1, 64], strides = [1, 1]} : vector<8x96xf32> to vector<1x64xf32>
    %85 = vector.extract_strided_slice %83 {offsets = [0, 0], sizes = [1, 64], strides = [1, 1]} : vector<1x96xf32> to vector<1x64xf32>
    %86 = arith.addf %84, %85 : vector<1x64xf32>
    %87 = arith.negf %86 : vector<1x64xf32>
    %88 = math.exp %87 : vector<1x64xf32>
    %cst_25 = arith.constant 1.000000e+00 : f32
    %89 = vector.broadcast %cst_25 : f32 to vector<1x64xf32>
    %90 = arith.addf %89, %88 : vector<1x64xf32>
    %91 = arith.divf %89, %90 : vector<1x64xf32>
    %92 = vector.extract_strided_slice %91 {offsets = [0, 0], sizes = [1, 32], strides = [1, 1]} : vector<1x64xf32> to vector<1x32xf32>
    %93 = vector.extract_strided_slice %91 {offsets = [0, 32], sizes = [1, 32], strides = [1, 1]} : vector<1x64xf32> to vector<1x32xf32>
    %94 = vector.extract_strided_slice %6 {offsets = [3, 64], sizes = [1, 32], strides = [1, 1]} : vector<8x96xf32> to vector<1x32xf32>
    %95 = vector.extract_strided_slice %83 {offsets = [0, 64], sizes = [1, 32], strides = [1, 1]} : vector<1x96xf32> to vector<1x32xf32>
    %96 = arith.addf %95, %8 : vector<1x32xf32>
    %97 = arith.mulf %92, %96 : vector<1x32xf32>
    %98 = arith.addf %94, %97 : vector<1x32xf32>
    %99 = math.tanh %98 : vector<1x32xf32>
    %cst_26 = arith.constant 1.000000e+00 : f32
    %100 = vector.broadcast %cst_26 : f32 to vector<1x32xf32>
    %101 = arith.subf %100, %93 : vector<1x32xf32>
    %102 = arith.mulf %101, %99 : vector<1x32xf32>
    %103 = arith.mulf %93, %80 : vector<1x32xf32>
    %104 = arith.addf %102, %103 : vector<1x32xf32>
    %c3 = arith.constant 3 : index
    %c0_27 = arith.constant 0 : index
    %105 = vector.load %arg9[%c3, %c0_27] : memref<8x32xf32, #tpu.memory_space<vmem>>, vector<1x32xf32>
    tpu.vector_store %arg9[%c3, %c0_27], %104 {strides = array<i32>} : memref<8x32xf32, #tpu.memory_space<vmem>>, vector<1x32xf32>,
    %106 = arith.truncf %104 : vector<1x32xf32> to vector<1x32xbf16>
    %cst_28 = arith.constant dense<0.000000e+00> : vector<1x96xf32>
    %107 = tpu.matmul %106, %7, %cst_28 {dimension_numbers = #tpu.dot_dimension_numbers<[1], [0], [0], [1], [0, 0, 1, 1], [], []>} : vector<1x32xbf16>, vector<32x96xbf16>, vector<1x96xf32> -> vector<1x96xf32>
    %108 = vector.extract_strided_slice %6 {offsets = [4, 0], sizes = [1, 64], strides = [1, 1]} : vector<8x96xf32> to vector<1x64xf32>
    %109 = vector.extract_strided_slice %107 {offsets = [0, 0], sizes = [1, 64], strides = [1, 1]} : vector<1x96xf32> to vector<1x64xf32>
    %110 = arith.addf %108, %109 : vector<1x64xf32>
    %111 = arith.negf %110 : vector<1x64xf32>
    %112 = math.exp %111 : vector<1x64xf32>
    %cst_29 = arith.constant 1.000000e+00 : f32
    %113 = vector.broadcast %cst_29 : f32 to vector<1x64xf32>
    %114 = arith.addf %113, %112 : vector<1x64xf32>
    %115 = arith.divf %113, %114 : vector<1x64xf32>
    %116 = vector.extract_strided_slice %115 {offsets = [0, 0], sizes = [1, 32], strides = [1, 1]} : vector<1x64xf32> to vector<1x32xf32>
    %117 = vector.extract_strided_slice %115 {offsets = [0, 32], sizes = [1, 32], strides = [1, 1]} : vector<1x64xf32> to vector<1x32xf32>
    %118 = vector.extract_strided_slice %6 {offsets = [4, 64], sizes = [1, 32], strides = [1, 1]} : vector<8x96xf32> to vector<1x32xf32>
    %119 = vector.extract_strided_slice %107 {offsets = [0, 64], sizes = [1, 32], strides = [1, 1]} : vector<1x96xf32> to vector<1x32xf32>
    %120 = arith.addf %119, %8 : vector<1x32xf32>
    %121 = arith.mulf %116, %120 : vector<1x32xf32>
    %122 = arith.addf %118, %121 : vector<1x32xf32>
    %123 = math.tanh %122 : vector<1x32xf32>
    %cst_30 = arith.constant 1.000000e+00 : f32
    %124 = vector.broadcast %cst_30 : f32 to vector<1x32xf32>
    %125 = arith.subf %124, %117 : vector<1x32xf32>
    %126 = arith.mulf %125, %123 : vector<1x32xf32>
    %127 = arith.mulf %117, %104 : vector<1x32xf32>
    %128 = arith.addf %126, %127 : vector<1x32xf32>
    %c4 = arith.constant 4 : index
    %c0_31 = arith.constant 0 : index
    %129 = vector.load %arg9[%c4, %c0_31] : memref<8x32xf32, #tpu.memory_space<vmem>>, vector<1x32xf32>
    tpu.vector_store %arg9[%c4, %c0_31], %128 {strides = array<i32>} : memref<8x32xf32, #tpu.memory_space<vmem>>, vector<1x32xf32>,
    %130 = arith.truncf %128 : vector<1x32xf32> to vector<1x32xbf16>
    %cst_32 = arith.constant dense<0.000000e+00> : vector<1x96xf32>
    %131 = tpu.matmul %130, %7, %cst_32 {dimension_numbers = #tpu.dot_dimension_numbers<[1], [0], [0], [1], [0, 0, 1, 1], [], []>} : vector<1x32xbf16>, vector<32x96xbf16>, vector<1x96xf32> -> vector<1x96xf32>
    %132 = vector.extract_strided_slice %6 {offsets = [5, 0], sizes = [1, 64], strides = [1, 1]} : vector<8x96xf32> to vector<1x64xf32>
    %133 = vector.extract_strided_slice %131 {offsets = [0, 0], sizes = [1, 64], strides = [1, 1]} : vector<1x96xf32> to vector<1x64xf32>
    %134 = arith.addf %132, %133 : vector<1x64xf32>
    %135 = arith.negf %134 : vector<1x64xf32>
    %136 = math.exp %135 : vector<1x64xf32>
    %cst_33 = arith.constant 1.000000e+00 : f32
    %137 = vector.broadcast %cst_33 : f32 to vector<1x64xf32>
    %138 = arith.addf %137, %136 : vector<1x64xf32>
    %139 = arith.divf %137, %138 : vector<1x64xf32>
    %140 = vector.extract_strided_slice %139 {offsets = [0, 0], sizes = [1, 32], strides = [1, 1]} : vector<1x64xf32> to vector<1x32xf32>
    %141 = vector.extract_strided_slice %139 {offsets = [0, 32], sizes = [1, 32], strides = [1, 1]} : vector<1x64xf32> to vector<1x32xf32>
    %142 = vector.extract_strided_slice %6 {offsets = [5, 64], sizes = [1, 32], strides = [1, 1]} : vector<8x96xf32> to vector<1x32xf32>
    %143 = vector.extract_strided_slice %131 {offsets = [0, 64], sizes = [1, 32], strides = [1, 1]} : vector<1x96xf32> to vector<1x32xf32>
    %144 = arith.addf %143, %8 : vector<1x32xf32>
    %145 = arith.mulf %140, %144 : vector<1x32xf32>
    %146 = arith.addf %142, %145 : vector<1x32xf32>
    %147 = math.tanh %146 : vector<1x32xf32>
    %cst_34 = arith.constant 1.000000e+00 : f32
    %148 = vector.broadcast %cst_34 : f32 to vector<1x32xf32>
    %149 = arith.subf %148, %141 : vector<1x32xf32>
    %150 = arith.mulf %149, %147 : vector<1x32xf32>
    %151 = arith.mulf %141, %128 : vector<1x32xf32>
    %152 = arith.addf %150, %151 : vector<1x32xf32>
    %c5 = arith.constant 5 : index
    %c0_35 = arith.constant 0 : index
    %153 = vector.load %arg9[%c5, %c0_35] : memref<8x32xf32, #tpu.memory_space<vmem>>, vector<1x32xf32>
    tpu.vector_store %arg9[%c5, %c0_35], %152 {strides = array<i32>} : memref<8x32xf32, #tpu.memory_space<vmem>>, vector<1x32xf32>,
    %154 = arith.truncf %152 : vector<1x32xf32> to vector<1x32xbf16>
    %cst_36 = arith.constant dense<0.000000e+00> : vector<1x96xf32>
    %155 = tpu.matmul %154, %7, %cst_36 {dimension_numbers = #tpu.dot_dimension_numbers<[1], [0], [0], [1], [0, 0, 1, 1], [], []>} : vector<1x32xbf16>, vector<32x96xbf16>, vector<1x96xf32> -> vector<1x96xf32>
    %156 = vector.extract_strided_slice %6 {offsets = [6, 0], sizes = [1, 64], strides = [1, 1]} : vector<8x96xf32> to vector<1x64xf32>
    %157 = vector.extract_strided_slice %155 {offsets = [0, 0], sizes = [1, 64], strides = [1, 1]} : vector<1x96xf32> to vector<1x64xf32>
    %158 = arith.addf %156, %157 : vector<1x64xf32>
    %159 = arith.negf %158 : vector<1x64xf32>
    %160 = math.exp %159 : vector<1x64xf32>
    %cst_37 = arith.constant 1.000000e+00 : f32
    %161 = vector.broadcast %cst_37 : f32 to vector<1x64xf32>
    %162 = arith.addf %161, %160 : vector<1x64xf32>
    %163 = arith.divf %161, %162 : vector<1x64xf32>
    %164 = vector.extract_strided_slice %163 {offsets = [0, 0], sizes = [1, 32], strides = [1, 1]} : vector<1x64xf32> to vector<1x32xf32>
    %165 = vector.extract_strided_slice %163 {offsets = [0, 32], sizes = [1, 32], strides = [1, 1]} : vector<1x64xf32> to vector<1x32xf32>
    %166 = vector.extract_strided_slice %6 {offsets = [6, 64], sizes = [1, 32], strides = [1, 1]} : vector<8x96xf32> to vector<1x32xf32>
    %167 = vector.extract_strided_slice %155 {offsets = [0, 64], sizes = [1, 32], strides = [1, 1]} : vector<1x96xf32> to vector<1x32xf32>
    %168 = arith.addf %167, %8 : vector<1x32xf32>
    %169 = arith.mulf %164, %168 : vector<1x32xf32>
    %170 = arith.addf %166, %169 : vector<1x32xf32>
    %171 = math.tanh %170 : vector<1x32xf32>
    %cst_38 = arith.constant 1.000000e+00 : f32
    %172 = vector.broadcast %cst_38 : f32 to vector<1x32xf32>
    %173 = arith.subf %172, %165 : vector<1x32xf32>
    %174 = arith.mulf %173, %171 : vector<1x32xf32>
    %175 = arith.mulf %165, %152 : vector<1x32xf32>
    %176 = arith.addf %174, %175 : vector<1x32xf32>
    %c6 = arith.constant 6 : index
    %c0_39 = arith.constant 0 : index
    %177 = vector.load %arg9[%c6, %c0_39] : memref<8x32xf32, #tpu.memory_space<vmem>>, vector<1x32xf32>
    tpu.vector_store %arg9[%c6, %c0_39], %176 {strides = array<i32>} : memref<8x32xf32, #tpu.memory_space<vmem>>, vector<1x32xf32>,
    %178 = arith.truncf %176 : vector<1x32xf32> to vector<1x32xbf16>
    %cst_40 = arith.constant dense<0.000000e+00> : vector<1x96xf32>
    %179 = tpu.matmul %178, %7, %cst_40 {dimension_numbers = #tpu.dot_dimension_numbers<[1], [0], [0], [1], [0, 0, 1, 1], [], []>} : vector<1x32xbf16>, vector<32x96xbf16>, vector<1x96xf32> -> vector<1x96xf32>
    %180 = vector.extract_strided_slice %6 {offsets = [7, 0], sizes = [1, 64], strides = [1, 1]} : vector<8x96xf32> to vector<1x64xf32>
    %181 = vector.extract_strided_slice %179 {offsets = [0, 0], sizes = [1, 64], strides = [1, 1]} : vector<1x96xf32> to vector<1x64xf32>
    %182 = arith.addf %180, %181 : vector<1x64xf32>
    %183 = arith.negf %182 : vector<1x64xf32>
    %184 = math.exp %183 : vector<1x64xf32>
    %cst_41 = arith.constant 1.000000e+00 : f32
    %185 = vector.broadcast %cst_41 : f32 to vector<1x64xf32>
    %186 = arith.addf %185, %184 : vector<1x64xf32>
    %187 = arith.divf %185, %186 : vector<1x64xf32>
    %188 = vector.extract_strided_slice %187 {offsets = [0, 0], sizes = [1, 32], strides = [1, 1]} : vector<1x64xf32> to vector<1x32xf32>
    %189 = vector.extract_strided_slice %187 {offsets = [0, 32], sizes = [1, 32], strides = [1, 1]} : vector<1x64xf32> to vector<1x32xf32>
    %190 = vector.extract_strided_slice %6 {offsets = [7, 64], sizes = [1, 32], strides = [1, 1]} : vector<8x96xf32> to vector<1x32xf32>
    %191 = vector.extract_strided_slice %179 {offsets = [0, 64], sizes = [1, 32], strides = [1, 1]} : vector<1x96xf32> to vector<1x32xf32>
    %192 = arith.addf %191, %8 : vector<1x32xf32>
    %193 = arith.mulf %188, %192 : vector<1x32xf32>
    %194 = arith.addf %190, %193 : vector<1x32xf32>
    %195 = math.tanh %194 : vector<1x32xf32>
    %cst_42 = arith.constant 1.000000e+00 : f32
    %196 = vector.broadcast %cst_42 : f32 to vector<1x32xf32>
    %197 = arith.subf %196, %189 : vector<1x32xf32>
    %198 = arith.mulf %197, %195 : vector<1x32xf32>
    %199 = arith.mulf %189, %176 : vector<1x32xf32>
    %200 = arith.addf %198, %199 : vector<1x32xf32>
    %c7 = arith.constant 7 : index
    %c0_43 = arith.constant 0 : index
    %201 = vector.load %arg9[%c7, %c0_43] : memref<8x32xf32, #tpu.memory_space<vmem>>, vector<1x32xf32>
    tpu.vector_store %arg9[%c7, %c0_43], %200 {strides = array<i32>} : memref<8x32xf32, #tpu.memory_space<vmem>>, vector<1x32xf32>,
    %c0_44 = arith.constant 0 : index
    %c0_45 = arith.constant 0 : index
    %202 = vector.load %arg9[%c0_44, %c0_45] : memref<8x32xf32, #tpu.memory_space<vmem>>, vector<8x32xf32>
    %203 = arith.truncf %202 : vector<8x32xf32> to vector<8x32xbf16>
    %c0_46 = arith.constant 0 : index
    %c0_47 = arith.constant 0 : index
    %204 = vector.load %arg6[%c0_46, %c0_47] : memref<32x8xbf16, #tpu.memory_space<vmem>>, vector<32x8xbf16>
    %cst_48 = arith.constant dense<0.000000e+00> : vector<8x8xf32>
    %205 = tpu.matmul %203, %204, %cst_48 {dimension_numbers = #tpu.dot_dimension_numbers<[1], [0], [0], [1], [0, 0, 1, 1], [], []>} : vector<8x32xbf16>, vector<32x8xbf16>, vector<8x8xf32> -> vector<8x8xf32>
    %c0_49 = arith.constant 0 : index
    %c0_50 = arith.constant 0 : index
    %206 = vector.load %arg7[%c0_49, %c0_50] : memref<1x8xf32, #tpu.memory_space<vmem>>, vector<1x8xf32>
    %207 = vector.broadcast %206 : vector<1x8xf32> to vector<8x8xf32>
    %208 = arith.addf %205, %207 : vector<8x8xf32>
    %c0_51 = arith.constant 0 : index
    %c0_52 = arith.constant 0 : index
    %209 = vector.load %arg8[%c0_51, %c0_52] : memref<8x8xf32, #tpu.memory_space<vmem>>, vector<8x8xf32>
    tpu.vector_store %arg8[%c0_51, %c0_52], %208 {strides = array<i32>} : memref<8x8xf32, #tpu.memory_space<vmem>>, vector<8x8xf32>,
    return
  }
}

</mosaic_0001>

<bundles_post_ra>
// kernel: tpu_custom_call.1
= control target key start
LH: loop header
LB: loop body
LE: loop exit
PB: predicated region body
PF: predicated region fallthrough
CT: control target
= control target key end

     0   :  { %13 = vsyncpa [#allocation4], 0  ;;  %s1146_s0 = inlined_call_operand.hbm [shape: f32[8,16], index: 0, kind: input, shape index: {}]   ;;  %s1147_s1 = inlined_call_operand.vmem [shape: f32[1,32], index: 1, kind: input, shape index: {}]   ;;  %s1148_s2 = inlined_call_operand.hbm [shape: bf16[16,96], index: 2, kind: input, shape index: {}]   ;;  %s1149_s3 = inlined_call_operand.vmem [shape: bf16[32,96], index: 3, kind: input, shape index: {}]   ;;  %s1150_s4 = inlined_call_operand.vmem [shape: f32[1,96], index: 4, kind: input, shape index: {}]   ;;  %s1151_s5 = inlined_call_operand.vmem [shape: f32[1,32], index: 5, kind: input, shape index: {}]   ;;  %s1152_s6 = inlined_call_operand.vmem [shape: bf16[32,8], index: 6, kind: input, shape index: {}]   ;;  %s1153_s7 = inlined_call_operand.vmem [shape: f32[1,8], index: 7, kind: input, shape index: {}]   ;;  %s1154_s8 = inlined_call_operand.hbm [shape: f32[8,8], index: 8, kind: output, shape index: {}]  }
   0x1   :  { %14 = vsyncpa [#allocation7], 0 }
   0x2   :  { %15 = vsyncpa [#allocation5], 0  ;;  %s21_s29 = sshll.u32 %s1146_s0, 4  ;;  %s937_s30 = smov [#allocation3]   ;;  %s22_s29 = int_to_ptr.hbm [resolvable:$true] %s21_s29 }
   0x3   :  { %s23_s9 = sshll.u32 %s937_s30, 4  ;;  %s33_s12 = sshll.u32 %s1148_s2, 4  ;;  %s24_s9 = int_to_ptr.vmem [resolvable:$true] %s23_s9  ;;  %s34_s12 = int_to_ptr.hbm [resolvable:$true] %s33_s12 }
   0x4   :  { %26 = dma.hbm_to_vmem [thread:$0]  %s22_s29, 128, %s24_s9, [#allocation4]  }
   0x5   :  { %s938_s13 = smov [#allocation6]   ;;  %s939_s15 = smov 64  }
   0x6   :  { %s35_s14 = sshll.u32 %s938_s13, 4  ;;  %s940_s16 = smov 4   ;;  %s36_s14 = int_to_ptr.vmem [resolvable:$true] %s35_s14 }
   0x7   :  { %41 = dma.hbm_to_vmem [thread:$0]  %s34_s12, 128, %s36_s14, [#allocation7], %s939_s15, %s939_s15, %s940_s16  }
   0x8   :  { %931 = dma.done.wait [#allocation4], 128  }
   0x9   :  { %932 = vsyncadd [#allocation4], 4294967168 }
   0xa   :  { %933 = dma.done.wait [#allocation7], 128  }
   0xb   :  { %934 = vsyncadd [#allocation7], 4294967168  ;;  %v797_v0 = vld [vmem:[%s1149_s3 + $0x8] sm:$0xff]  ;;  %v795_v1 = vld [vmem:[#allocation6] sm:$0xff]  ;;  %vm75_vm0 = vcmask 130048   ;;  %vm111_vm1 = vcmask 261120  }
   0xc   :  { %v796_v2 = vld [vmem:[%s1149_s3] sm:$0xff]  ;;  %v61_v3 = vld [vmem:[#allocation3] sm:$0xff]  ;;  %121 = vmatpush.bf16.msra.mxu1 %v797_v0  ;;  %86 = vmatpush.bf16.msra.mxu0 %v795_v1  ;;  %s941_s3 = smov 32   ;;  %s943_s9 = smov [#allocation8]  }
   0xd   :  { %v97_v4 = vld [vmem:[%s1147_s1] sm:$0x1]  ;;  %v62_v5 = vpack.c.bf16 %v61_v3, %v61_v3  ;;  %197 = vmatpush.bf16.msra.mxu2 %v797_v0  ;;  %271 = vmatpush.bf16.msra.mxu3 %v797_v0  ;;  %s744_s10 = sshll.u32 %s943_s9, 4  ;;  %s746_s13 = sshll.u32 %s1154_s8, 4  ;;  %s745_s10 = int_to_ptr.vmem [resolvable:$true] %s744_s10  ;;  %s747_s13 = int_to_ptr.hbm [resolvable:$true] %s746_s13 }
   0xe   :  { %v807_v6 = vld [vmem:[%s1151_s5] ss:$0 sm:$0xff]  ;;  %v98_v8 = vpack.c.bf16 %v97_v4, %v97_v4 }
   0xf   :  { %v808_v7 = vld [vmem:[%s1147_s1] ss:$0 sm:$0xff]  ;;  %150 = vrot.lane.b32.xlu0 %v807_v6, %s939_s15  ;;  %761 = vmatmul.msk.bf16.vlgmr.msra.gmra.mxu0 %vm75_vm0, %v62_v5 }
  0x10   :  { %173 = vrot.lane.b32.xlu2 %v808_v7, %s941_s3  ;;  %122 = vmatpush.bf16.msra.mxu1 %v796_v2  ;;  %v809_v15 = vld [vmem:[%s1150_s4] ss:$0 sm:$0xff]  ;;  %s942_s4 = smov 96  }
  0x11   :  { %344 = vmatpush.bf16.msrb.mxu0 %v797_v0  ;;  %198 = vmatpush.bf16.msra.mxu2 %v796_v2 }
  0x12   :  { %272 = vmatpush.bf16.msra.mxu3 %v796_v2 }
  0x13   :  { %770 = vmatmul.msk.bf16.vlgmr.msra.gmra.mxu1 %vm111_vm1, %v98_v8 }
  0x14   :  { %419 = vmatpush.bf16.msrb.mxu1 %v797_v0 }
  0x15   :  { %492 = vmatpush.bf16.msrb.mxu2 %v797_v0  ;;  %345 = vmatpush.bf16.msrb.mxu0 %v796_v2 }
  0x16   :  { %567 = vmatpush.bf16.msrb.mxu3 %v797_v0 }
  0x18   :  { %420 = vmatpush.bf16.msrb.mxu1 %v796_v2 }
  0x19   :  { %640 = vmatpush.bf16.msra.mxu0 %v797_v0  ;;  %493 = vmatpush.bf16.msrb.mxu2 %v796_v2 }
  0x1a   :  { %568 = vmatpush.bf16.msrb.mxu3 %v796_v2 }
  0x1d   :  { %641 = vmatpush.bf16.msra.mxu0 %v796_v2 }
  0x6a   :  { %v174_v36 = vpop.permute.xlu2 %173 }
  0x81   :  { %v1014_v10 = vpop.permute.xlu0 %150 }
  0x8c   :  { %v88_v9 = vpop.f32.mrf.mxu0 }
  0x8d   :  { %v1021_v16 = vadd.f32 %v809_v15, %v88_v9 }
  0x90   :  { %v124_v11 = vpop.f32.mrf.mxu1 }
  0x91   :  { %v153_v12 = vadd.f32 %v1014_v10, %v124_v11  ;;  %v128_v17 = vadd.f32 %v124_v11, %v1021_v16 }
  0x93   :  { %155 = vrot.lane.b32.xlu0 %v153_v12, %s939_s15  ;;  %v771_v18 = vmul.f32 -1.442695, %v128_v17 }
  0x94   :  { %v90_v13 = vpop.f32.mrf.mxu0 }
  0x95   :  { %811 = vpow2.f32 %v771_v18 }
  0x98   :  { %v126_v14 = vpop.f32.mrf.mxu1 }
  0x9b   :  { %v812_v19 = vpop.eup %811 }
  0x9c   :  { %v132_v20 = vadd.f32 1.0, %v812_v19 }
  0x9e   :  { %813 = vrcp.f32 %v132_v20  ;;  %v144_v26 = vand.u32 2147483648, %v132_v20  ;;  %vm138_vm3 = vweird.f32 %v132_v20  ;;  %v142_v27 = vand.u32 2147483647, %v132_v20 }
  0xa0   :  { %v145_v29 = vor.u32 1.1754944e-38, %v144_v26  ;;  %vm143_vm5 = vcmp.eq.f32.partialorder %v142_v27, 8.507059e+37 }
  0xa4   :  { %v814_v21 = vpop.eup %813 }
  0xa5   :  { %v134_v22 = vmul.f32 %v814_v21, %v132_v20  ;;  %vm139_vm2 = vweird.f32 %v814_v21 }
  0xa6   :  { %vm140_vm4 = vmor %vm138_vm3, %vm139_vm2 }
  0xa7   :  { %v135_v23 = vsub.f32 1.0, %v134_v22 }
  0xa9   :  { %v136_v24 = vmul.f32 %v814_v21, %v135_v23 }
  0xab   :  { %v137_v25 = vadd.f32 %v814_v21, %v136_v24 }
  0xad   :  { %v141_v28 = vsel %vm140_vm4, %v814_v21, %v137_v25 }
  0xae   :  { %v146_v30 = vsel %vm143_vm5, %v145_v29, %v141_v28 }
  0xaf   :  { %v165_v37 = vsub.f32 1.0, %v146_v30  ;;  %v176_v39 = vmul.f32 %v174_v36, %v146_v30 }
 0x105   :  { %v156_v31 = vpop.permute.xlu0 %155 }
 0x106   :  { %v158_v32 = vmul.f32 %v156_v31, %v146_v30 }
 0x108   :  { %160 = vrot.lane.b32.xlu1 %v158_v32, %s939_s15 }
 0x17a   :  { %v161_v33 = vpop.permute.xlu1 %160 }
 0x17b   :  { %v163_v34 = vadd.f32 %v161_v33, %v1021_v16 }
 0x17d   :  { %815 = vtanh.f32 %v163_v34 }
 0x183   :  { %v816_v35 = vpop.eup %815 }
 0x184   :  { %167 = vrot.lane.b32.xlu1 %v816_v35, %s942_s4 }
 0x1f6   :  { %v168_v38 = vpop.permute.xlu1 %167 }
 0x1f7   :  { %v170_v40 = vmul.f32 %v168_v38, %v165_v37 }
 0x1f9   :  { %v1027_v41 = vadd.f32 %v176_v39, %v170_v40 }
 0x1fb   :  { %v184_v42 = vpack.c.bf16 %v1027_v41, %v1027_v41  ;;  %v246_v5 = vrot.slane %v1027_v41, 7 }
 0x1fd   :  { %186 = vrot.lane.b32.xlu2 %v184_v42, %s942_s4 }
 0x257   :  { %v187_v43 = vpop.permute.xlu2 %186 }
 0x258   :  { %772 = vmatmul.msk.bf16.vlgmr.msra.gmra.mxu2 %vm111_vm1, %v187_v43 }
 0x2db   :  { %v200_v44 = vpop.f32.mrf.mxu2 }
 0x2dc   :  { %v227_v45 = vadd.f32 %v200_v44, %v1014_v10  ;;  %v205_v48 = vrot.slane %v200_v44, 7 }
 0x2de   :  { %v229_v46 = vrot.slane %v227_v45, 7  ;;  %v207_v49 = vadd.f32 %v205_v48, %v1021_v16 }
 0x2e0   :  { %230 = vrot.lane.b32.xlu0 %v229_v46, %s939_s15  ;;  %v773_v50 = vmul.f32 -1.442695, %v207_v49 }
 0x2e2   :  { %817 = vpow2.f32 %v773_v50 }
 0x2e3   :  { %v202_v47 = vpop.f32.mrf.mxu2 }
 0x2e8   :  { %v818_v51 = vpop.eup %817 }
 0x2e9   :  { %v211_v52 = vadd.f32 1.0, %v818_v51 }
 0x2eb   :  { %819 = vrcp.f32 %v211_v52  ;;  %v223_v58 = vand.u32 2147483648, %v211_v52  ;;  %vm217_vm7 = vweird.f32 %v211_v52  ;;  %v221_v59 = vand.u32 2147483647, %v211_v52 }
 0x2ed   :  { %v224_v61 = vor.u32 1.1754944e-38, %v223_v58  ;;  %vm222_vm9 = vcmp.eq.f32.partialorder %v221_v59, 8.507059e+37 }
 0x2f1   :  { %v820_v53 = vpop.eup %819 }
 0x2f2   :  { %v213_v54 = vmul.f32 %v820_v53, %v211_v52  ;;  %vm218_vm6 = vweird.f32 %v820_v53 }
 0x2f3   :  { %vm219_vm8 = vmor %vm217_vm7, %vm218_vm6 }
 0x2f4   :  { %v214_v55 = vsub.f32 1.0, %v213_v54 }
 0x2f6   :  { %v215_v56 = vmul.f32 %v820_v53, %v214_v55 }
 0x2f8   :  { %v216_v57 = vadd.f32 %v820_v53, %v215_v56 }
 0x2fa   :  { %v220_v60 = vsel %vm219_vm8, %v820_v53, %v216_v57 }
 0x2fb   :  { %v225_v63 = vsel %vm222_vm9, %v224_v61, %v220_v60 }
 0x2fc   :  { %v240_v4 = vsub.f32 1.0, %v225_v63  ;;  %v248_v7 = vmul.f32 %v246_v5, %v225_v63 }
 0x352   :  { %v231_v62 = vpop.permute.xlu0 %230 }
 0x353   :  { %v233_v0 = vmul.f32 %v231_v62, %v225_v63 }
 0x355   :  { %235 = vrot.lane.b32.xlu1 %v233_v0, %s939_s15 }
 0x3c7   :  { %v236_v1 = vpop.permute.xlu1 %235 }
 0x3c8   :  { %v238_v2 = vadd.f32 %v236_v1, %v1021_v16 }
 0x3ca   :  { %821 = vtanh.f32 %v238_v2 }
 0x3d0   :  { %v822_v3 = vpop.eup %821 }
 0x3d1   :  { %242 = vrot.lane.b32.xlu2 %v822_v3, %s942_s4 }
 0x42b   :  { %v243_v6 = vpop.permute.xlu2 %242 }
 0x42c   :  { %v245_v8 = vmul.f32 %v243_v6, %v240_v4 }
 0x42e   :  { %v1040_v9 = vadd.f32 %v248_v7, %v245_v8 }
 0x430   :  { %v256_v11 = vpack.c.bf16 %v1040_v9, %v1040_v9  ;;  %v320_v40 = vrot.slane %v1040_v9, 7 }
 0x432   :  { %v258_v12 = vshrl.u32 %v256_v11, 16 }
 0x434   :  { %260 = vrot.lane.b32.xlu0 %v258_v12, %s942_s4 }
 0x4a6   :  { %v261_v13 = vpop.permute.xlu0 %260 }
 0x4a7   :  { %774 = vmatmul.msk.bf16.vlgmr.msra.gmra.mxu3 %vm111_vm1, %v261_v13 }
 0x52a   :  { %v274_v14 = vpop.f32.mrf.mxu3 }
 0x52b   :  { %v301_v15 = vadd.f32 %v274_v14, %v1014_v10  ;;  %v279_v19 = vrot.slane %v274_v14, 6 }
 0x52d   :  { %v303_v17 = vrot.slane %v301_v15, 6  ;;  %v281_v20 = vadd.f32 %v279_v19, %v1021_v16 }
 0x52f   :  { %304 = vrot.lane.b32.xlu1 %v303_v17, %s939_s15  ;;  %v775_v21 = vmul.f32 -1.442695, %v281_v20 }
 0x531   :  { %823 = vpow2.f32 %v775_v21 }
 0x532   :  { %v276_v18 = vpop.f32.mrf.mxu3 }
 0x537   :  { %v824_v22 = vpop.eup %823 }
 0x538   :  { %v285_v23 = vadd.f32 1.0, %v824_v22 }
 0x53a   :  { %825 = vrcp.f32 %v285_v23  ;;  %v297_v29 = vand.u32 2147483648, %v285_v23  ;;  %vm291_vm11 = vweird.f32 %v285_v23  ;;  %v295_v30 = vand.u32 2147483647, %v285_v23 }
 0x53c   :  { %v298_v32 = vor.u32 1.1754944e-38, %v297_v29  ;;  %vm296_vm13 = vcmp.eq.f32.partialorder %v295_v30, 8.507059e+37 }
 0x540   :  { %v826_v24 = vpop.eup %825 }
 0x541   :  { %v287_v25 = vmul.f32 %v826_v24, %v285_v23  ;;  %vm292_vm10 = vweird.f32 %v826_v24 }
 0x542   :  { %vm293_vm12 = vmor %vm291_vm11, %vm292_vm10 }
 0x543   :  { %v288_v26 = vsub.f32 1.0, %v287_v25 }
 0x545   :  { %v289_v27 = vmul.f32 %v826_v24, %v288_v26 }
 0x547   :  { %v290_v28 = vadd.f32 %v826_v24, %v289_v27 }
 0x549   :  { %v294_v31 = vsel %vm293_vm12, %v826_v24, %v290_v28 }
 0x54a   :  { %v299_v34 = vsel %vm296_vm13, %v298_v32, %v294_v31 }
 0x54b   :  { %v314_v39 = vsub.f32 1.0, %v299_v34  ;;  %v322_v43 = vmul.f32 %v320_v40, %v299_v34 }
 0x5a1   :  { %v305_v33 = vpop.permute.xlu1 %304 }
 0x5a2   :  { %v307_v35 = vmul.f32 %v305_v33, %v299_v34 }
 0x5a4   :  { %309 = vrot.lane.b32.xlu2 %v307_v35, %s939_s15 }
 0x5fe   :  { %v310_v36 = vpop.permute.xlu2 %309 }
 0x5ff   :  { %v312_v37 = vadd.f32 %v310_v36, %v1021_v16 }
 0x601   :  { %827 = vtanh.f32 %v312_v37 }
 0x607   :  { %v828_v38 = vpop.eup %827 }
 0x608   :  { %316 = vrot.lane.b32.xlu0 %v828_v38, %s942_s4 }
 0x67a   :  { %v317_v42 = vpop.permute.xlu0 %316 }
 0x67b   :  { %v319_v44 = vmul.f32 %v317_v42, %v314_v39 }
 0x67d   :  { %v1053_v45 = vadd.f32 %v322_v43, %v319_v44 }
 0x67f   :  { %v330_v46 = vpack.c.bf16 %v1053_v45, %v1053_v45  ;;  %v393_v12 = vrot.slane %v1053_v45, 7 }
 0x681   :  { %v332_v47 = vrot.slane %v330_v46, 1 }
 0x683   :  { %333 = vrot.lane.b32.xlu1 %v332_v47, %s942_s4 }
 0x6f5   :  { %v334_v48 = vpop.permute.xlu1 %333 }
 0x6f6   :  { %776 = vmatmul.msk.bf16.vlgmr.msrb.gmra.mxu0 %vm111_vm1, %v334_v48 }
 0x773   :  { %v347_v49 = vpop.f32.mrf.mxu0 }
 0x774   :  { %v374_v50 = vadd.f32 %v347_v49, %v1014_v10  ;;  %v352_v53 = vrot.slane %v347_v49, 5 }
 0x776   :  { %v376_v51 = vrot.slane %v374_v50, 5  ;;  %v354_v54 = vadd.f32 %v352_v53, %v1021_v16 }
 0x778   :  { %377 = vrot.lane.b32.xlu2 %v376_v51, %s939_s15  ;;  %v777_v55 = vmul.f32 -1.442695, %v354_v54 }
 0x77a   :  { %829 = vpow2.f32 %v777_v55 }
 0x77b   :  { %v349_v52 = vpop.f32.mrf.mxu0 }
 0x780   :  { %v830_v56 = vpop.eup %829 }
 0x781   :  { %v358_v57 = vadd.f32 1.0, %v830_v56 }
 0x783   :  { %831 = vrcp.f32 %v358_v57  ;;  %v370_v63 = vand.u32 2147483648, %v358_v57  ;;  %vm364_vm15 = vweird.f32 %v358_v57  ;;  %v368_v0 = vand.u32 2147483647, %v358_v57 }
 0x785   :  { %v371_v2 = vor.u32 1.1754944e-38, %v370_v63  ;;  %vm369_vm2 = vcmp.eq.f32.partialorder %v368_v0, 8.507059e+37 }
 0x789   :  { %v832_v58 = vpop.eup %831 }
 0x78a   :  { %v360_v59 = vmul.f32 %v832_v58, %v358_v57  ;;  %vm365_vm14 = vweird.f32 %v832_v58 }
 0x78b   :  { %vm366_vm0 = vmor %vm364_vm15, %vm365_vm14 }
 0x78c   :  { %v361_v60 = vsub.f32 1.0, %v360_v59 }
 0x78e   :  { %v362_v61 = vmul.f32 %v832_v58, %v361_v60 }
 0x790   :  { %v363_v62 = vadd.f32 %v832_v58, %v362_v61 }
 0x792   :  { %v367_v1 = vsel %vm366_vm0, %v832_v58, %v363_v62 }
 0x793   :  { %v372_v4 = vsel %vm369_vm2, %v371_v2, %v367_v1 }
 0x794   :  { %v387_v11 = vsub.f32 1.0, %v372_v4  ;;  %v395_v14 = vmul.f32 %v393_v12, %v372_v4 }
 0x7d2   :  { %v378_v3 = vpop.permute.xlu2 %377 }
 0x7d3   :  { %v380_v5 = vmul.f32 %v378_v3, %v372_v4 }
 0x7d5   :  { %382 = vrot.lane.b32.xlu0 %v380_v5, %s939_s15 }
 0x847   :  { %v383_v6 = vpop.permute.xlu0 %382 }
 0x848   :  { %v385_v7 = vadd.f32 %v383_v6, %v1021_v16 }
 0x84a   :  { %833 = vtanh.f32 %v385_v7 }
 0x850   :  { %v834_v8 = vpop.eup %833 }
 0x851   :  { %389 = vrot.lane.b32.xlu1 %v834_v8, %s942_s4 }
 0x8c3   :  { %v390_v13 = vpop.permute.xlu1 %389 }
 0x8c4   :  { %v392_v15 = vmul.f32 %v390_v13, %v387_v11 }
 0x8c6   :  { %v1066_v17 = vadd.f32 %v395_v14, %v392_v15 }
 0x8c8   :  { %v403_v18 = vpack.c.bf16 %v1066_v17, %v1066_v17  ;;  %v468_v49 = vrot.slane %v1066_v17, 7 }
 0x8ca   :  { %v405_v19 = vshrl.u32 %v403_v18, 16 }
 0x8cc   :  { %v407_v20 = vrot.slane %v405_v19, 1 }
 0x8ce   :  { %408 = vrot.lane.b32.xlu2 %v407_v20, %s942_s4 }
 0x928   :  { %v409_v21 = vpop.permute.xlu2 %408 }
 0x929   :  { %778 = vmatmul.msk.bf16.vlgmr.msrb.gmra.mxu1 %vm111_vm1, %v409_v21 }
 0x9a6   :  { %v422_v22 = vpop.f32.mrf.mxu1 }
 0x9a7   :  { %v449_v23 = vadd.f32 %v422_v22, %v1014_v10  ;;  %v427_v26 = vrot.slane %v422_v22, 4 }
 0x9a9   :  { %v451_v24 = vrot.slane %v449_v23, 4  ;;  %v429_v27 = vadd.f32 %v427_v26, %v1021_v16 }
 0x9ab   :  { %452 = vrot.lane.b32.xlu0 %v451_v24, %s939_s15  ;;  %v779_v28 = vmul.f32 -1.442695, %v429_v27 }
 0x9ad   :  { %835 = vpow2.f32 %v779_v28 }
 0x9ae   :  { %v424_v25 = vpop.f32.mrf.mxu1 }
 0x9b3   :  { %v836_v29 = vpop.eup %835 }
 0x9b4   :  { %v433_v30 = vadd.f32 1.0, %v836_v29 }
 0x9b6   :  { %837 = vrcp.f32 %v433_v30  ;;  %v445_v36 = vand.u32 2147483648, %v433_v30  ;;  %vm439_vm4 = vweird.f32 %v433_v30  ;;  %v443_v37 = vand.u32 2147483647, %v433_v30 }
 0x9b8   :  { %v446_v39 = vor.u32 1.1754944e-38, %v445_v36  ;;  %vm444_vm6 = vcmp.eq.f32.partialorder %v443_v37, 8.507059e+37 }
 0x9bc   :  { %v838_v31 = vpop.eup %837 }
 0x9bd   :  { %v435_v32 = vmul.f32 %v838_v31, %v433_v30  ;;  %vm440_vm3 = vweird.f32 %v838_v31 }
 0x9be   :  { %vm441_vm5 = vmor %vm439_vm4, %vm440_vm3  ;;  %vm182_vm4 = vcmask 253952  }
 0x9bf   :  { %v436_v33 = vsub.f32 1.0, %v435_v32 }
 0x9c1   :  { %v437_v34 = vmul.f32 %v838_v31, %v436_v33 }
 0x9c3   :  { %v438_v35 = vadd.f32 %v838_v31, %v437_v34 }
 0x9c5   :  { %v442_v38 = vsel %vm441_vm5, %v838_v31, %v438_v35  ;;  %vm401_vm5 = vcmask 257027  }
 0x9c6   :  { %v447_v42 = vsel %vm444_vm6, %v446_v39, %v442_v38  ;;  %vm624_vm6 = vcmask 260102  }
 0x9c7   :  { %v462_v48 = vsub.f32 1.0, %v447_v42  ;;  %v470_v51 = vmul.f32 %v468_v49, %v447_v42 }
 0xa1d   :  { %v453_v40 = vpop.permute.xlu0 %452 }
 0xa1e   :  { %v455_v43 = vmul.f32 %v453_v40, %v447_v42 }
 0xa20   :  { %457 = vrot.lane.b32.xlu1 %v455_v43, %s939_s15 }
 0xa92   :  { %v458_v44 = vpop.permute.xlu1 %457 }
 0xa93   :  { %v460_v46 = vadd.f32 %v458_v44, %v1021_v16 }
 0xa95   :  { %839 = vtanh.f32 %v460_v46 }
 0xa9b   :  { %v840_v47 = vpop.eup %839 }
 0xa9c   :  { %464 = vrot.lane.b32.xlu2 %v840_v47, %s942_s4 }
 0xaf6   :  { %v465_v50 = vpop.permute.xlu2 %464 }
 0xaf7   :  { %v467_v52 = vmul.f32 %v465_v50, %v462_v48 }
 0xaf9   :  { %v1079_v53 = vadd.f32 %v470_v51, %v467_v52 }
 0xafb   :  { %v478_v54 = vpack.c.bf16 %v1079_v53, %v1079_v53  ;;  %v541_v22 = vrot.slane %v1079_v53, 7 }
 0xafd   :  { %v480_v55 = vrot.slane %v478_v54, 2 }
 0xaff   :  { %481 = vrot.lane.b32.xlu0 %v480_v55, %s942_s4 }
 0xb71   :  { %v482_v56 = vpop.permute.xlu0 %481 }
 0xb72   :  { %780 = vmatmul.msk.bf16.vlgmr.msrb.gmra.mxu2 %vm111_vm1, %v482_v56 }
 0xbf5   :  { %v495_v57 = vpop.f32.mrf.mxu2 }
 0xbf6   :  { %v522_v58 = vadd.f32 %v495_v57, %v1014_v10  ;;  %v500_v61 = vrot.slane %v495_v57, 3 }
 0xbf8   :  { %v524_v59 = vrot.slane %v522_v58, 3  ;;  %v502_v62 = vadd.f32 %v500_v61, %v1021_v16 }
 0xbfa   :  { %525 = vrot.lane.b32.xlu1 %v524_v59, %s939_s15  ;;  %v781_v63 = vmul.f32 -1.442695, %v502_v62 }
 0xbfc   :  { %841 = vpow2.f32 %v781_v63 }
 0xbfd   :  { %v497_v60 = vpop.f32.mrf.mxu2 }
 0xc02   :  { %v842_v0 = vpop.eup %841 }
 0xc03   :  { %v506_v1 = vadd.f32 1.0, %v842_v0 }
 0xc05   :  { %843 = vrcp.f32 %v506_v1  ;;  %v518_v7 = vand.u32 2147483648, %v506_v1  ;;  %vm512_vm8 = vweird.f32 %v506_v1  ;;  %v516_v8 = vand.u32 2147483647, %v506_v1 }
 0xc07   :  { %v519_v12 = vor.u32 1.1754944e-38, %v518_v7  ;;  %vm517_vm10 = vcmp.eq.f32.partialorder %v516_v8, 8.507059e+37 }
 0xc0b   :  { %v844_v2 = vpop.eup %843 }
 0xc0c   :  { %v508_v3 = vmul.f32 %v844_v2, %v506_v1  ;;  %vm513_vm7 = vweird.f32 %v844_v2 }
 0xc0d   :  { %vm514_vm9 = vmor %vm512_vm8, %vm513_vm7  ;;  %vm254_vm7 = vcmask 254977   ;;  %vm476_vm8 = vcmask 258052  }
 0xc0e   :  { %v509_v4 = vsub.f32 1.0, %v508_v3 }
 0xc10   :  { %v510_v5 = vmul.f32 %v844_v2, %v509_v4 }
 0xc12   :  { %v511_v6 = vadd.f32 %v844_v2, %v510_v5 }
 0xc14   :  { %v515_v11 = vsel %vm514_vm9, %v844_v2, %v511_v6  ;;  %vm328_vm9 = vcmask 256002  }
 0xc15   :  { %v520_v14 = vsel %vm517_vm10, %v519_v12, %v515_v11  ;;  %vm549_vm10 = vcmask 259077  }
 0xc16   :  { %v535_v21 = vsub.f32 1.0, %v520_v14  ;;  %v543_v24 = vmul.f32 %v541_v22, %v520_v14 }
 0xc6c   :  { %v526_v13 = vpop.permute.xlu1 %525 }
 0xc6d   :  { %v528_v15 = vmul.f32 %v526_v13, %v520_v14 }
 0xc6f   :  { %530 = vrot.lane.b32.xlu2 %v528_v15, %s939_s15 }
 0xcc9   :  { %v531_v18 = vpop.permute.xlu2 %530 }
 0xcca   :  { %v533_v19 = vadd.f32 %v531_v18, %v1021_v16 }
 0xccc   :  { %845 = vtanh.f32 %v533_v19 }
 0xcd2   :  { %v846_v20 = vpop.eup %845 }
 0xcd3   :  { %537 = vrot.lane.b32.xlu0 %v846_v20, %s942_s4 }
 0xd45   :  { %v538_v23 = vpop.permute.xlu0 %537 }
 0xd46   :  { %v540_v25 = vmul.f32 %v538_v23, %v535_v21 }
 0xd48   :  { %v1092_v26 = vadd.f32 %v543_v24, %v540_v25 }
 0xd4a   :  { %v551_v27 = vpack.c.bf16 %v1092_v26, %v1092_v26  ;;  %v616_v59 = vrot.slane %v1092_v26, 7 }
 0xd4c   :  { %v553_v28 = vshrl.u32 %v551_v27, 16 }
 0xd4e   :  { %v555_v29 = vrot.slane %v553_v28, 2 }
 0xd50   :  { %556 = vrot.lane.b32.xlu1 %v555_v29, %s942_s4 }
 0xdc2   :  { %v557_v30 = vpop.permute.xlu1 %556 }
 0xdc3   :  { %782 = vmatmul.msk.bf16.vlgmr.msrb.gmra.mxu3 %vm111_vm1, %v557_v30 }
 0xe46   :  { %v570_v31 = vpop.f32.mrf.mxu3 }
 0xe47   :  { %v597_v32 = vadd.f32 %v570_v31, %v1014_v10  ;;  %v575_v35 = vrot.slane %v570_v31, 2 }
 0xe49   :  { %v599_v33 = vrot.slane %v597_v32, 2  ;;  %v577_v36 = vadd.f32 %v575_v35, %v1021_v16 }
 0xe4b   :  { %600 = vrot.lane.b32.xlu2 %v599_v33, %s939_s15  ;;  %v783_v37 = vmul.f32 -1.442695, %v577_v36 }
 0xe4d   :  { %847 = vpow2.f32 %v783_v37 }
 0xe4e   :  { %v572_v34 = vpop.f32.mrf.mxu3 }
 0xe53   :  { %v848_v38 = vpop.eup %847 }
 0xe54   :  { %v581_v39 = vadd.f32 1.0, %v848_v38 }
 0xe56   :  { %849 = vrcp.f32 %v581_v39  ;;  %v593_v47 = vand.u32 2147483648, %v581_v39  ;;  %vm587_vm12 = vweird.f32 %v581_v39  ;;  %v591_v48 = vand.u32 2147483647, %v581_v39 }
 0xe58   :  { %v594_v50 = vor.u32 1.1754944e-38, %v593_v47  ;;  %vm592_vm14 = vcmp.eq.f32.partialorder %v591_v48, 8.507059e+37 }
 0xe5c   :  { %v850_v40 = vpop.eup %849 }
 0xe5d   :  { %v583_v42 = vmul.f32 %v850_v40, %v581_v39  ;;  %vm588_vm11 = vweird.f32 %v850_v40 }
 0xe5e   :  { %vm589_vm13 = vmor %vm587_vm12, %vm588_vm11  ;;  %vm697_vm11 = vcmask 261127   ;;  %vm737_vm12 = vcmask 64512  }
 0xe5f   :  { %v584_v43 = vsub.f32 1.0, %v583_v42 }
 0xe61   :  { %v585_v44 = vmul.f32 %v850_v40, %v584_v43  ;;  %v810_v43 = vld [vmem:[%s1153_s7] ss:$0 sm:$0xff] }
 0xe63   :  { %v586_v46 = vadd.f32 %v850_v40, %v585_v44 }
 0xe65   :  { %v590_v49 = vsel %vm589_vm13, %v850_v40, %v586_v46 }
 0xe66   :  { %v595_v52 = vsel %vm592_vm14, %v594_v50, %v590_v49 }
 0xe67   :  { %v610_v58 = vsub.f32 1.0, %v595_v52  ;;  %v618_v61 = vmul.f32 %v616_v59, %v595_v52 }
 0xea5   :  { %v601_v51 = vpop.permute.xlu2 %600 }
 0xea6   :  { %v603_v54 = vmul.f32 %v601_v51, %v595_v52 }
 0xea8   :  { %605 = vrot.lane.b32.xlu0 %v603_v54, %s939_s15 }
 0xf1a   :  { %v606_v55 = vpop.permute.xlu0 %605 }
 0xf1b   :  { %v608_v56 = vadd.f32 %v606_v55, %v1021_v16 }
 0xf1d   :  { %851 = vtanh.f32 %v608_v56 }
 0xf23   :  { %v852_v57 = vpop.eup %851 }
 0xf24   :  { %612 = vrot.lane.b32.xlu1 %v852_v57, %s942_s4 }
 0xf96   :  { %v613_v60 = vpop.permute.xlu1 %612 }
 0xf97   :  { %v615_v62 = vmul.f32 %v613_v60, %v610_v58 }
 0xf99   :  { %v1105_v63 = vadd.f32 %v618_v61, %v615_v62 }
 0xf9b   :  { %v626_v0 = vpack.c.bf16 %v1105_v63, %v1105_v63  ;;  %v689_v33 = vrot.slane %v1105_v63, 7 }
 0xf9d   :  { %v628_v1 = vrot.slane %v626_v0, 3 }
 0xf9f   :  { %629 = vrot.lane.b32.xlu2 %v628_v1, %s942_s4 }
 0xff9   :  { %v630_v2 = vpop.permute.xlu2 %629 }
 0xffa   :  { %784 = vmatmul.msk.bf16.vlgmr.msra.gmra.mxu0 %vm111_vm1, %v630_v2 }
0x1077   :  { %v643_v3 = vpop.f32.mrf.mxu0 }
0x1078   :  { %v670_v4 = vadd.f32 %v643_v3, %v1014_v10  ;;  %v648_v7 = vrot.slane %v643_v3, 1 }
0x107a   :  { %v672_v5 = vrot.slane %v670_v4, 1  ;;  %v650_v8 = vadd.f32 %v648_v7, %v1021_v16 }
0x107c   :  { %673 = vrot.lane.b32.xlu0 %v672_v5, %s939_s15  ;;  %v785_v11 = vmul.f32 -1.442695, %v650_v8 }
0x107e   :  { %853 = vpow2.f32 %v785_v11 }
0x107f   :  { %v645_v6 = vpop.f32.mrf.mxu0 }
0x1084   :  { %179 = vrot.lane.b32.xlu0 %v1027_v41, %s942_s4  ;;  %v854_v12 = vpop.eup %853 }
0x1085   :  { %v654_v10 = vadd.f32 1.0, %v854_v12 }
0x1087   :  { %855 = vrcp.f32 %v654_v10  ;;  %v666_v41 = vand.u32 2147483648, %v654_v10  ;;  %vm660_vm0 = vweird.f32 %v654_v10 }
0x1089   :  { %v667_v21 = vor.u32 1.1754944e-38, %v666_v41 }
0x108c   :  { %398 = vrot.lane.b32.xlu0 %v1066_v17, %s942_s4  ;;  %v664_v17 = vand.u32 2147483647, %v654_v10 }
0x108d   :  { %v856_v13 = vpop.eup %855 }
0x108e   :  { %v656_v14 = vmul.f32 %v856_v13, %v654_v10  ;;  %vm661_vm15 = vweird.f32 %v856_v13  ;;  %vm665_vm3 = vcmp.eq.f32.partialorder %v664_v17, 8.507059e+37 }
0x108f   :  { %vm662_vm2 = vmor %vm660_vm0, %vm661_vm15 }
0x1090   :  { %v657_v15 = vsub.f32 1.0, %v656_v14 }
0x1092   :  { %v658_v18 = vmul.f32 %v856_v13, %v657_v15 }
0x1094   :  { %621 = vrot.lane.b32.xlu0 %v1105_v63, %s942_s4  ;;  %v659_v19 = vadd.f32 %v856_v13, %v658_v18 }
0x1096   :  { %v663_v20 = vsel %vm662_vm2, %v856_v13, %v659_v19 }
0x1097   :  { %v668_v23 = vsel %vm665_vm3, %v667_v21, %v663_v20 }
0x1098   :  { %v691_v35 = vmul.f32 %v689_v33, %v668_v23 }
0x10ee   :  { %v674_v22 = vpop.permute.xlu0 %673 }
0x10ef   :  { %v676_v24 = vmul.f32 %v674_v22, %v668_v23 }
0x10f1   :  { %678 = vrot.lane.b32.xlu1 %v676_v24, %s939_s15 }
0x10f6   :  { %v180_v25 = vpop.permute.xlu0 %179 }
0x10f7   :  { %183 = vst.msk [vmem:[#allocation2] sm:$0x1] %vm182_vm4, %v180_v25 }
0x10f9   :  { %251 = vrot.lane.b32.xlu1 %v1040_v9, %s942_s4 }
0x10fe   :  { %v399_v27 = vpop.permute.xlu0 %398 }
0x10ff   :  { %402 = vst.msk [vmem:[#allocation2] sm:$0x8] %vm401_vm5, %v399_v27 }
0x1101   :  { %473 = vrot.lane.b32.xlu1 %v1079_v53, %s942_s4  ;;  %v683_v53 = vsub.f32 1.0, %v668_v23 }
0x1106   :  { %v622_v28 = vpop.permute.xlu0 %621 }
0x1107   :  { %625 = vst.msk [vmem:[#allocation2] sm:$0x40] %vm624_vm6, %v622_v28 }
0x1163   :  { %v679_v29 = vpop.permute.xlu1 %678 }
0x1164   :  { %v681_v30 = vadd.f32 %v679_v29, %v1021_v16  ;;  %v799_v16 = vld [vmem:[%s1152_s6 + $0x8] sm:$0xff] }
0x1165   :  { %730 = vmatpush.bf16.msra.mxu1 %v799_v16 }
0x1166   :  { %857 = vtanh.f32 %v681_v30 }
0x116b   :  { %v252_v31 = vpop.permute.xlu1 %251 }
0x116c   :  { %v858_v32 = vpop.eup %857  ;;  %255 = vst.msk [vmem:[#allocation2] sm:$0x2] %vm254_vm7, %v252_v31 }
0x116d   :  { %685 = vrot.lane.b32.xlu2 %v858_v32, %s942_s4 }
0x1173   :  { %v474_v9 = vpop.permute.xlu1 %473 }
0x1174   :  { %477 = vst.msk [vmem:[#allocation2] sm:$0x10] %vm476_vm8, %v474_v9 }
0x1175   :  { %325 = vrot.lane.b32.xlu2 %v1053_v45, %s942_s4 }
0x117d   :  { %546 = vrot.lane.b32.xlu2 %v1092_v26, %s942_s4  ;;  %v798_v26 = vld [vmem:[%s1152_s6] sm:$0xff] }
0x117e   :  { %731 = vmatpush.bf16.msra.mxu1 %v798_v26 }
0x11c7   :  { %v686_v34 = vpop.permute.xlu2 %685 }
0x11c8   :  { %v688_v36 = vmul.f32 %v686_v34, %v683_v53 }
0x11ca   :  { %v692_v37 = vadd.f32 %v691_v35, %v688_v36 }
0x11cc   :  { %694 = vrot.lane.b32.xlu1 %v692_v37, %s942_s4 }
0x11cf   :  { %v326_v38 = vpop.permute.xlu2 %325 }
0x11d0   :  { %329 = vst.msk [vmem:[#allocation2] sm:$0x4] %vm328_vm9, %v326_v38 }
0x11d7   :  { %v547_v45 = vpop.permute.xlu2 %546 }
0x11d8   :  { %550 = vst.msk [vmem:[#allocation2] sm:$0x20] %vm549_vm10, %v547_v45 }
0x123e   :  { %v695_v39 = vpop.permute.xlu1 %694 }
0x123f   :  { %698 = vst.msk [vmem:[#allocation2] sm:$0x80] %vm697_vm11, %v695_v39 }
0x1246   :  { %v699_v40 = vld [vmem:[#allocation2] sm:$0xff] }
0x1247   :  { %v700_v42 = vpack.c.bf16 %v699_v40, %v699_v40 }
0x1249   :  { %794 = vmatmul.msk.bf16.vlgmr.msra.gmra.mxu1 %vm111_vm1, %v700_v42 }
0x12c6   :  { %v733_v44 = vpop.f32.mrf.mxu1 }
0x12c7   :  { %v734_v46 = vadd.f32 %v810_v43, %v733_v44 }
0x12c9   :  { %738 = vst.msk [vmem:[#allocation8] sm:$0xff] %vm737_vm12, %v734_v46 }
0x12ca   :  { %749 = dma.vmem_to_hbm [thread:$0]  %s745_s10, 128, %s747_s13, [#allocation5]  }
0x12ce   :  { %v735_v47 = vpop.f32.mrf.mxu1 }
0x12cf   :  { %935 = dma.done.wait [#allocation5], 128  }
0x12d0   :  { %936 = vsyncadd [#allocation5], 4294967168 }
0x12d1   :  { %754 = vsyncpa [#allocation4], 1 }
0x12d2   :  { %755 = vsyncpa [#allocation7], 1 }
0x12d3   :  { %756 = vsyncpa [#allocation5], 1 }

</bundles_post_ra>
